<compile_context>
chip_gen: v7x
topology: tpu7x:2x2x1
jax: 0.10.0
libtpu: 0.0.40
codegen_flags: <defaults>
</compile_context>

<pallas_src>
import jax
import jax.numpy as jnp
from jax.experimental import pallas as pl
from jax.experimental.pallas import tpu as pltpu

_EPS = 1e-8
_LANE = 128


def _gelu_exact_f32(x):
    # matches torch.nn.functional.gelu default (erf-based, not tanh approx), in f32
    return 0.5 * x * (1.0 + jax.lax.erf(x * jnp.float32(0.7071067811865476)))


def _make_dish_kernel(L, Ld, has_dec, ch, norm_dtype):
    # NOTE: matches PyTorch's division by (L - 1); L == 1 gives inf/nan just like torch.
    inv_lm1 = (1.0 / float(L - 1)) if L > 1 else float("inf")
    n_full, rem = divmod(L, ch)
    n_full_d, rem_d = divmod(Ld, ch) if has_dec else (0, 0)

    def kernel(*refs):
        if has_dec:
            (x_ref, dec_ref, w0_ref, w1_ref, g_ref, b_ref,
             out_ref, dec_out_ref, phil_ref, phih_ref, xil_ref, xih_ref) = refs
        else:
            (x_ref, w0_ref, w1_ref, g_ref, b_ref,
             out_ref, phil_ref, phih_ref, xil_ref, xih_ref) = refs
            dec_ref = dec_out_ref = None

        TB, _, TN = x_ref.shape
        f32 = jnp.float32

        # ---- pass 1: theta_k = sum_l x*w_k, chunked over L, f32 accumulators ----
        # (w0/w1 are already f32 in VMEM; chunks keep live state in a few vregs.)
        def theta_chunk(xs, w0c, w1c, t0, t1):
            return (t0 + jnp.sum(xs * w0c[None, :, :], axis=1),
                    t1 + jnp.sum(xs * w1c[None, :, :], axis=1))

        def body1(i, carry):
            s = pl.multiple_of(i * ch, ch)
            xs = x_ref[:, pl.ds(s, ch), :].astype(f32)          # (TB, ch, TN)
            return theta_chunk(xs, w0_ref[pl.ds(s, ch), :],
                               w1_ref[pl.ds(s, ch), :], *carry)

        t0 = jnp.zeros((TB, TN), f32)
        t1 = jnp.zeros((TB, TN), f32)
        if n_full:
            t0, t1 = jax.lax.fori_loop(0, n_full, body1, (t0, t1))
        if rem:
            xs = x_ref[:, n_full * ch:, :].astype(f32)
            t0, t1 = theta_chunk(xs, w0_ref[n_full * ch:, :],
                                 w1_ref[n_full * ch:, :], t0, t1)

        phil = _gelu_exact_f32(t0)                              # (TB, TN)
        phih = _gelu_exact_f32(t1)
        phil_b = phil[:, None, :]
        phih_b = phih[:, None, :]

        # ---- pass 2: xi_k = sum_l (x - phi_k)^2 / (L-1), direct (matches torch) ----
        def var_chunk(xs, v0, v1):
            d0 = xs - phil_b
            d1 = xs - phih_b
            return (v0 + jnp.sum(d0 * d0, axis=1),
                    v1 + jnp.sum(d1 * d1, axis=1))

        def body2(i, carry):
            s = pl.multiple_of(i * ch, ch)
            xs = x_ref[:, pl.ds(s, ch), :].astype(f32)
            return var_chunk(xs, *carry)

        v0 = jnp.zeros((TB, TN), f32)
        v1 = jnp.zeros((TB, TN), f32)
        if n_full:
            v0, v1 = jax.lax.fori_loop(0, n_full, body2, (v0, v1))
        if rem:
            xs = x_ref[:, n_full * ch:, :].astype(f32)
            v0, v1 = var_chunk(xs, v0, v1)

        xil = v0 * inv_lm1
        xih = v1 * inv_lm1

        # lane-dense 2-D f32 stats outputs
        phil_ref[...] = phil.astype(phil_ref.dtype)
        phih_ref[...] = phih.astype(phih_ref.dtype)
        xil_ref[...] = xil.astype(xil_ref.dtype)
        xih_ref[...] = xih.astype(xih_ref.dtype)

        # ---- pass 3: normalize/store; rsqrt on EUP; subtract folded into offset ----
        gamma = g_ref[...]                                      # (1, TN) f32
        beta = b_ref[...]
        scale = jax.lax.rsqrt(xil + _EPS) * gamma               # (TB, TN)
        offset = beta - phil * scale                            # (TB, TN)
        scale_b = scale.astype(norm_dtype)[:, None, :]
        offset_b = offset.astype(norm_dtype)[:, None, :]

        def store_chunk(src_ref, dst_ref, s, size):
            xs = src_ref[:, pl.ds(s, size), :].astype(norm_dtype)
            dst_ref[:, pl.ds(s, size), :] = (xs * scale_b + offset_b).astype(dst_ref.dtype)

        def body3(i, _):
            s = pl.multiple_of(i * ch, ch)
            store_chunk(x_ref, out_ref, s, ch)
            return 0

        if n_full:
            jax.lax.fori_loop(0, n_full, body3, 0)
        if rem:
            store_chunk(x_ref, out_ref, n_full * ch, rem)

        if has_dec:
            def body4(i, _):
                s = pl.multiple_of(i * ch, ch)
                store_chunk(dec_ref, dec_out_ref, s, ch)
                return 0
            if n_full_d:
                jax.lax.fori_loop(0, n_full_d, body4, 0)
            if rem_d:
                store_chunk(dec_ref, dec_out_ref, n_full_d * ch, rem_d)

    return kernel


def dish_ts_forward(batch_x, reduce_mlayer, gamma, beta, dec_inp=None,
                    vmem_budget_bytes=16 * 1024 * 1024, normalize_in_bf16=True):
    """Equivalent of DishTS.forward(batch_x, mode='forward', dec_inp=dec_inp)."""
    B, L, N = batch_x.shape
    dt = batch_x.dtype
    has_dec = dec_inp is not None
    Ld = dec_inp.shape[1] if has_dec else 0

    # ---- glue (plain JAX): parameter split/transpose; params stay f32 (tiny) ----
    w0 = jnp.transpose(reduce_mlayer[:, :, 0]).astype(jnp.float32)   # (L, N)
    w1 = jnp.transpose(reduce_mlayer[:, :, 1]).astype(jnp.float32)   # (L, N)
    g2 = gamma.reshape(1, N).astype(jnp.float32)
    b2 = beta.reshape(1, N).astype(jnp.float32)

    TN = _LANE
    n_tiles_n = pl.cdiv(N, TN)

    isz = jnp.dtype(dt).itemsize
    pack = {4: 8, 2: 16, 1: 32}.get(isz, 8)   # sublane packing of the streamed dtype
    sub = 8                                   # stats outputs are f32 -> 8-row min tile

    # Honest per-batch-row VMEM footprint: double-buffered in+out tiles for x (and dec)
    # plus bounded per-chunk f32 staging / accumulators (flat fudge).
    row_bytes = 4 * (L + Ld) * TN * isz + 32 * 1024
    TB = int(max(1, min(B, vmem_budget_bytes // row_bytes)))

    # v7x megacore: if there is only a single lane tile, cap TB so the batch axis
    # still gives >= 2 parallel grid steps (both TensorCores get work).
    if n_tiles_n == 1 and B > sub:
        half = -(-B // 2)
        TB = min(TB, -(-half // sub) * sub)

    # stats output blocks are (TB, 128) f32: TB must be a multiple of 8 unless TB == B
    if TB < B:
        TB = max(sub, (TB // sub) * sub)
    TB = min(TB, B)
    n_tiles_b = pl.cdiv(B, TB)

    # grid: N tiles outer, batch tiles inner -> w0/w1/gamma/beta block indices are
    # constant across consecutive steps, so Pallas skips their re-DMA.
    grid = (n_tiles_n, n_tiles_b)

    # vmem limit derived from the actual footprint (headroom, capped for v7x's 64 MiB)
    est = TB * row_bytes + 2 * 2 * L * TN * 4 + (1 << 20)
    vmem_limit = int(max(16 * 1024 * 1024, min(40 * 1024 * 1024, 2 * est), est + (4 << 20)))

    ch = pack if L >= pack else L             # chunk rows for the in-kernel L loops
    # bf16 normalize halves VALU/vreg cost of the big streams on v6e/v7x; keep f32 on
    # v5e (no bf16 VPU) by passing normalize_in_bf16=False there.
    norm_dtype = (jnp.bfloat16
                  if (dt == jnp.bfloat16 and normalize_in_bf16)
                  else jnp.float32)

    x_spec = pl.BlockSpec((TB, L, TN), lambda ni, bi: (bi, 0, ni))
    w_spec = pl.BlockSpec((L, TN), lambda ni, bi: (0, ni))      # constant over inner (batch) steps
    v_spec = pl.BlockSpec((1, TN), lambda ni, bi: (0, ni))
    stat_spec = pl.BlockSpec((TB, TN), lambda ni, bi: (bi, ni))

    in_specs = [x_spec]
    inputs = [batch_x]
    out_shapes = [jax.ShapeDtypeStruct((B, L, N), dt)]
    out_specs = [x_spec]
    if has_dec:
        dec_spec = pl.BlockSpec((TB, Ld, TN), lambda ni, bi: (bi, 0, ni))
        in_specs.append(dec_spec)
        inputs.append(dec_inp)
        out_shapes.append(jax.ShapeDtypeStruct((B, Ld, N), dt))
        out_specs.append(dec_spec)
    in_specs += [w_spec, w_spec, v_spec, v_spec]
    inputs += [w0, w1, g2, b2]
    out_shapes += [jax.ShapeDtypeStruct((B, N), jnp.float32)] * 4   # phil, phih, xil, xih
    out_specs += [stat_spec] * 4

    results = pl.pallas_call(
        _make_dish_kernel(L, Ld, has_dec, ch, norm_dtype),
        out_shape=tuple(out_shapes),
        grid=grid,
        in_specs=in_specs,
        out_specs=tuple(out_specs),
        compiler_params=pltpu.CompilerParams(
            dimension_semantics=("parallel", "parallel"),
            vmem_limit_bytes=vmem_limit,
        ),
    )(*inputs)

    idx = 0
    out_x = results[idx]; idx += 1
    out_dec = None
    if has_dec:
        out_dec = results[idx]; idx += 1
    phil, phih, xil, xih = (r.reshape(B, 1, N) for r in results[idx:idx + 4])

    # TODO(synk): mode='inverse' (inverse_process) not implemented; forward mode only.
    return (out_x, out_dec), (phil, phih, xil, xih)


def _reference_forward(batch_x, reduce_mlayer, gamma, beta, dec_inp):
    # pure-JAX reference mirroring the PyTorch code exactly
    x_t = jnp.transpose(batch_x, (2, 0, 1))                        # (N, B, L)
    theta = jnp.einsum('nbl,nlk->nbk', x_t, reduce_mlayer)         # (N, B, 2)
    theta = jnp.transpose(theta, (1, 2, 0))                        # (B, 2, N)
    theta = jax.nn.gelu(theta, approximate=False)
    phil, phih = theta[:, :1, :], theta[:, 1:, :]
    L = batch_x.shape[1]
    xil = jnp.sum((batch_x - phil) ** 2, axis=1, keepdims=True) / (L - 1)
    xih = jnp.sum((batch_x - phih) ** 2, axis=1, keepdims=True) / (L - 1)

    def fwd(z):
        return ((z - phil) / jnp.sqrt(xil + _EPS)) * gamma + beta

    return fwd(batch_x), fwd(dec_inp), (phil, phih, xil, xih)


if __name__ == "__main__":
    B, L, N = 2, 8, 4          # batch, seq_len (lookback), n_series
    L_dec = 6                  # decoder-input length
    key = jax.random.PRNGKey(0)
    k1, k2, k3 = jax.random.split(key, 3)

    batch_x = jax.random.normal(k1, (B, L, N), dtype=jnp.float32)
    dec_inp = jax.random.normal(k2, (B, L_dec, N), dtype=jnp.float32)

    # deterministic params: dish_init == 'standard' -> rand(N, L, 2) / L
    reduce_mlayer = jax.random.uniform(k3, (N, L, 2), dtype=jnp.float32) / L
    gamma = jnp.ones((N,), dtype=jnp.float32)
    beta = jnp.zeros((N,), dtype=jnp.float32)

    (out_x, out_dec), (phil, phih, xil, xih) = dish_ts_forward(
        batch_x, reduce_mlayer, gamma, beta, dec_inp=dec_inp)
    jax.block_until_ready(out_x)
    jax.block_until_ready(out_dec)

    ref_x, ref_dec, (rphil, rphih, rxil, rxih) = _reference_forward(
        batch_x, reduce_mlayer, gamma, beta, dec_inp)

    assert jnp.allclose(out_x, ref_x, atol=1e-5, rtol=1e-4)
    assert jnp.allclose(out_dec, ref_dec, atol=1e-5, rtol=1e-4)
    assert jnp.allclose(phil, rphil, atol=1e-5, rtol=1e-4)
    assert jnp.allclose(phih, rphih, atol=1e-5, rtol=1e-4)
    assert jnp.allclose(xil, rxil, atol=1e-5, rtol=1e-4)
    assert jnp.allclose(xih, rxih, atol=1e-5, rtol=1e-4)

    print("KERNEL_OK")
</pallas_src>

<mosaic_0001>
module attributes {stable_mosaic.version = 11 : i64} {
  func.func @kernel(%arg0: i32, %arg1: i32, %arg2: memref<2x8x128xf32, #tpu.memory_space<vmem>>, %arg3: memref<2x6x128xf32, #tpu.memory_space<vmem>>, %arg4: memref<8x128xf32, #tpu.memory_space<vmem>>, %arg5: memref<8x128xf32, #tpu.memory_space<vmem>>, %arg6: memref<1x128xf32, #tpu.memory_space<vmem>>, %arg7: memref<1x128xf32, #tpu.memory_space<vmem>>, %arg8: memref<2x8x128xf32, #tpu.memory_space<vmem>>, %arg9: memref<2x6x128xf32, #tpu.memory_space<vmem>>, %arg10: memref<2x128xf32, #tpu.memory_space<vmem>>, %arg11: memref<2x128xf32, #tpu.memory_space<vmem>>, %arg12: memref<2x128xf32, #tpu.memory_space<vmem>>, %arg13: memref<2x128xf32, #tpu.memory_space<vmem>>) attributes {dimension_semantics = [#tpu.dimension_semantics<parallel>, #tpu.dimension_semantics<parallel>], iteration_bounds = array<i64: 1, 1>, scalar_prefetch = 0 : i64, scratch_operands = 0 : i64, tpu.core_type = #tpu.core_type<tc>, window_params = [{transform_indices = @transform_0, window_bounds = array<i64: 2, 8, 128>}, {transform_indices = @transform_1, window_bounds = array<i64: 2, 6, 128>}, {transform_indices = @transform_2, window_bounds = array<i64: 8, 128>}, {transform_indices = @transform_3, window_bounds = array<i64: 8, 128>}, {transform_indices = @transform_4, window_bounds = array<i64: 1, 128>}, {transform_indices = @transform_5, window_bounds = array<i64: 1, 128>}, {transform_indices = @transform_6, window_bounds = array<i64: 2, 8, 128>}, {transform_indices = @transform_7, window_bounds = array<i64: 2, 6, 128>}, {transform_indices = @transform_8, window_bounds = array<i64: 2, 128>}, {transform_indices = @transform_9, window_bounds = array<i64: 2, 128>}, {transform_indices = @transform_10, window_bounds = array<i64: 2, 128>}, {transform_indices = @transform_11, window_bounds = array<i64: 2, 128>}]} {
    %cst = arith.constant 0.000000e+00 : f32
    %0 = vector.broadcast %cst : f32 to vector<2x128xf32>
    %cst_0 = arith.constant 0.000000e+00 : f32
    %1 = vector.broadcast %cst_0 : f32 to vector<2x128xf32>
    %c0_i32 = arith.constant 0 : i32
    %c8_i32 = arith.constant 8 : i32
    %2 = arith.muli %c0_i32, %c8_i32 : i32
    %3 = tpu.assume_multiple %2, 8 : i32
    %c0 = arith.constant 0 : index
    %4 = arith.index_cast %3 : i32 to index
    %c0_1 = arith.constant 0 : index
    %5 = vector.load %arg2[%c0, %4, %c0_1] : memref<2x8x128xf32, #tpu.memory_space<vmem>>, vector<2x8x128xf32>
    %6 = arith.index_cast %3 : i32 to index
    %c0_2 = arith.constant 0 : index
    %7 = vector.load %arg4[%6, %c0_2] : memref<8x128xf32, #tpu.memory_space<vmem>>, vector<8x128xf32>
    %8 = arith.index_cast %3 : i32 to index
    %c0_3 = arith.constant 0 : index
    %9 = vector.load %arg5[%8, %c0_3] : memref<8x128xf32, #tpu.memory_space<vmem>>, vector<8x128xf32>
    %10 = vector.shape_cast %7 : vector<8x128xf32> to vector<1x8x128xf32>
    %11 = vector.broadcast %10 : vector<1x8x128xf32> to vector<2x8x128xf32>
    %12 = arith.mulf %5, %11 : vector<2x8x128xf32>
    %cst_4 = arith.constant dense<0.000000e+00> : vector<2x128xf32>
    %13 = vector.multi_reduction <add>, %12, %cst_4 [1] : vector<2x8x128xf32> to vector<2x128xf32>
    %14 = arith.addf %0, %13 : vector<2x128xf32>
    %15 = vector.shape_cast %9 : vector<8x128xf32> to vector<1x8x128xf32>
    %16 = vector.broadcast %15 : vector<1x8x128xf32> to vector<2x8x128xf32>
    %17 = arith.mulf %5, %16 : vector<2x8x128xf32>
    %cst_5 = arith.constant dense<0.000000e+00> : vector<2x128xf32>
    %18 = vector.multi_reduction <add>, %17, %cst_5 [1] : vector<2x8x128xf32> to vector<2x128xf32>
    %19 = arith.addf %1, %18 : vector<2x128xf32>
    %c1_i32 = arith.constant 1 : i32
    %cst_6 = arith.constant 5.000000e-01 : f32
    %20 = vector.broadcast %cst_6 : f32 to vector<2x128xf32>
    %21 = arith.mulf %20, %14 : vector<2x128xf32>
    %cst_7 = arith.constant 0.707106769 : f32
    %22 = vector.broadcast %cst_7 : f32 to vector<2x128xf32>
    %23 = arith.mulf %14, %22 : vector<2x128xf32>
    %24 = math.erf %23 : vector<2x128xf32>
    %cst_8 = arith.constant 1.000000e+00 : f32
    %25 = vector.broadcast %cst_8 : f32 to vector<2x128xf32>
    %26 = arith.addf %25, %24 : vector<2x128xf32>
    %27 = arith.mulf %21, %26 : vector<2x128xf32>
    %cst_9 = arith.constant 5.000000e-01 : f32
    %28 = vector.broadcast %cst_9 : f32 to vector<2x128xf32>
    %29 = arith.mulf %28, %19 : vector<2x128xf32>
    %cst_10 = arith.constant 0.707106769 : f32
    %30 = vector.broadcast %cst_10 : f32 to vector<2x128xf32>
    %31 = arith.mulf %19, %30 : vector<2x128xf32>
    %32 = math.erf %31 : vector<2x128xf32>
    %cst_11 = arith.constant 1.000000e+00 : f32
    %33 = vector.broadcast %cst_11 : f32 to vector<2x128xf32>
    %34 = arith.addf %33, %32 : vector<2x128xf32>
    %35 = arith.mulf %29, %34 : vector<2x128xf32>
    %36 = vector.shape_cast %27 : vector<2x128xf32> to vector<2x1x128xf32>
    %37 = vector.shape_cast %35 : vector<2x128xf32> to vector<2x1x128xf32>
    %cst_12 = arith.constant 0.000000e+00 : f32
    %38 = vector.broadcast %cst_12 : f32 to vector<2x128xf32>
    %cst_13 = arith.constant 0.000000e+00 : f32
    %39 = vector.broadcast %cst_13 : f32 to vector<2x128xf32>
    %c0_i32_14 = arith.constant 0 : i32
    %c8_i32_15 = arith.constant 8 : i32
    %40 = arith.muli %c0_i32_14, %c8_i32_15 : i32
    %41 = tpu.assume_multiple %40, 8 : i32
    %c0_16 = arith.constant 0 : index
    %42 = arith.index_cast %41 : i32 to index
    %c0_17 = arith.constant 0 : index
    %43 = vector.load %arg2[%c0_16, %42, %c0_17] : memref<2x8x128xf32, #tpu.memory_space<vmem>>, vector<2x8x128xf32>
    %44 = vector.broadcast %36 : vector<2x1x128xf32> to vector<2x8x128xf32>
    %45 = arith.subf %43, %44 : vector<2x8x128xf32>
    %46 = vector.broadcast %37 : vector<2x1x128xf32> to vector<2x8x128xf32>
    %47 = arith.subf %43, %46 : vector<2x8x128xf32>
    %48 = arith.mulf %45, %45 : vector<2x8x128xf32>
    %cst_18 = arith.constant dense<0.000000e+00> : vector<2x128xf32>
    %49 = vector.multi_reduction <add>, %48, %cst_18 [1] : vector<2x8x128xf32> to vector<2x128xf32>
    %50 = arith.addf %38, %49 : vector<2x128xf32>
    %51 = arith.mulf %47, %47 : vector<2x8x128xf32>
    %cst_19 = arith.constant dense<0.000000e+00> : vector<2x128xf32>
    %52 = vector.multi_reduction <add>, %51, %cst_19 [1] : vector<2x8x128xf32> to vector<2x128xf32>
    %53 = arith.addf %39, %52 : vector<2x128xf32>
    %c1_i32_20 = arith.constant 1 : i32
    %cst_21 = arith.constant 0.142857149 : f32
    %54 = vector.broadcast %cst_21 : f32 to vector<2x128xf32>
    %55 = arith.mulf %50, %54 : vector<2x128xf32>
    %cst_22 = arith.constant 0.142857149 : f32
    %56 = vector.broadcast %cst_22 : f32 to vector<2x128xf32>
    %57 = arith.mulf %53, %56 : vector<2x128xf32>
    %c0_23 = arith.constant 0 : index
    %c0_24 = arith.constant 0 : index
    %58 = vector.load %arg10[%c0_23, %c0_24] : memref<2x128xf32, #tpu.memory_space<vmem>>, vector<2x128xf32>
    tpu.vector_store %arg10[%c0_23, %c0_24], %27 {strides = array<i32>} : memref<2x128xf32, #tpu.memory_space<vmem>>, vector<2x128xf32>,
    %c0_25 = arith.constant 0 : index
    %c0_26 = arith.constant 0 : index
    %59 = vector.load %arg11[%c0_25, %c0_26] : memref<2x128xf32, #tpu.memory_space<vmem>>, vector<2x128xf32>
    tpu.vector_store %arg11[%c0_25, %c0_26], %35 {strides = array<i32>} : memref<2x128xf32, #tpu.memory_space<vmem>>, vector<2x128xf32>,
    %c0_27 = arith.constant 0 : index
    %c0_28 = arith.constant 0 : index
    %60 = vector.load %arg12[%c0_27, %c0_28] : memref<2x128xf32, #tpu.memory_space<vmem>>, vector<2x128xf32>
    tpu.vector_store %arg12[%c0_27, %c0_28], %55 {strides = array<i32>} : memref<2x128xf32, #tpu.memory_space<vmem>>, vector<2x128xf32>,
    %c0_29 = arith.constant 0 : index
    %c0_30 = arith.constant 0 : index
    %61 = vector.load %arg13[%c0_29, %c0_30] : memref<2x128xf32, #tpu.memory_space<vmem>>, vector<2x128xf32>
    tpu.vector_store %arg13[%c0_29, %c0_30], %57 {strides = array<i32>} : memref<2x128xf32, #tpu.memory_space<vmem>>, vector<2x128xf32>,
    %c0_31 = arith.constant 0 : index
    %c0_32 = arith.constant 0 : index
    %62 = vector.load %arg6[%c0_31, %c0_32] : memref<1x128xf32, #tpu.memory_space<vmem>>, vector<1x128xf32>
    %c0_33 = arith.constant 0 : index
    %c0_34 = arith.constant 0 : index
    %63 = vector.load %arg7[%c0_33, %c0_34] : memref<1x128xf32, #tpu.memory_space<vmem>>, vector<1x128xf32>
    %cst_35 = arith.constant 9.99999993E-9 : f32
    %64 = vector.broadcast %cst_35 : f32 to vector<2x128xf32>
    %65 = arith.addf %55, %64 : vector<2x128xf32>
    %66 = math.rsqrt %65 : vector<2x128xf32>
    %67 = vector.broadcast %62 : vector<1x128xf32> to vector<2x128xf32>
    %68 = arith.mulf %66, %67 : vector<2x128xf32>
    %69 = arith.mulf %27, %68 : vector<2x128xf32>
    %70 = vector.broadcast %63 : vector<1x128xf32> to vector<2x128xf32>
    %71 = arith.subf %70, %69 : vector<2x128xf32>
    %72 = vector.shape_cast %68 : vector<2x128xf32> to vector<2x1x128xf32>
    %73 = vector.shape_cast %71 : vector<2x128xf32> to vector<2x1x128xf32>
    %c0_i32_36 = arith.constant 0 : i32
    %c8_i32_37 = arith.constant 8 : i32
    %74 = arith.muli %c0_i32_36, %c8_i32_37 : i32
    %75 = tpu.assume_multiple %74, 8 : i32
    %c0_38 = arith.constant 0 : index
    %76 = arith.index_cast %75 : i32 to index
    %c0_39 = arith.constant 0 : index
    %77 = vector.load %arg2[%c0_38, %76, %c0_39] : memref<2x8x128xf32, #tpu.memory_space<vmem>>, vector<2x8x128xf32>
    %78 = vector.broadcast %72 : vector<2x1x128xf32> to vector<2x8x128xf32>
    %79 = arith.mulf %77, %78 : vector<2x8x128xf32>
    %80 = vector.broadcast %73 : vector<2x1x128xf32> to vector<2x8x128xf32>
    %81 = arith.addf %79, %80 : vector<2x8x128xf32>
    %c0_40 = arith.constant 0 : index
    %82 = arith.index_cast %75 : i32 to index
    %c0_41 = arith.constant 0 : index
    %83 = vector.load %arg8[%c0_40, %82, %c0_41] : memref<2x8x128xf32, #tpu.memory_space<vmem>>, vector<2x8x128xf32>
    tpu.vector_store %arg8[%c0_40, %82, %c0_41], %81 {strides = array<i32>} : memref<2x8x128xf32, #tpu.memory_space<vmem>>, vector<2x8x128xf32>,
    %c1_i32_42 = arith.constant 1 : i32
    %c0_43 = arith.constant 0 : index
    %c0_44 = arith.constant 0 : index
    %c0_45 = arith.constant 0 : index
    %84 = vector.load %arg3[%c0_43, %c0_44, %c0_45] : memref<2x6x128xf32, #tpu.memory_space<vmem>>, vector<2x6x128xf32>
    %85 = vector.broadcast %72 : vector<2x1x128xf32> to vector<2x6x128xf32>
    %86 = arith.mulf %84, %85 : vector<2x6x128xf32>
    %87 = vector.broadcast %73 : vector<2x1x128xf32> to vector<2x6x128xf32>
    %88 = arith.addf %86, %87 : vector<2x6x128xf32>
    %c0_46 = arith.constant 0 : index
    %c0_47 = arith.constant 0 : index
    %c0_48 = arith.constant 0 : index
    %89 = vector.load %arg9[%c0_46, %c0_47, %c0_48] : memref<2x6x128xf32, #tpu.memory_space<vmem>>, vector<2x6x128xf32>
    tpu.vector_store %arg9[%c0_46, %c0_47, %c0_48], %88 {strides = array<i32>} : memref<2x6x128xf32, #tpu.memory_space<vmem>>, vector<2x6x128xf32>,
    return
  }
  func.func @transform_0(%arg0: i32, %arg1: i32) -> (i32, i32, i32) {
    %c0_i32 = arith.constant 0 : i32
    %c0_i32_0 = arith.constant 0 : i32
    return %arg1, %c0_i32, %arg0 : i32, i32, i32
  }
  func.func @transform_1(%arg0: i32, %arg1: i32) -> (i32, i32, i32) {
    %c0_i32 = arith.constant 0 : i32
    %c0_i32_0 = arith.constant 0 : i32
    return %arg1, %c0_i32, %arg0 : i32, i32, i32
  }
  func.func @transform_2(%arg0: i32, %arg1: i32) -> (i32, i32) {
    %c0_i32 = arith.constant 0 : i32
    %c0_i32_0 = arith.constant 0 : i32
    return %c0_i32, %arg0 : i32, i32
  }
  func.func @transform_3(%arg0: i32, %arg1: i32) -> (i32, i32) {
    %c0_i32 = arith.constant 0 : i32
    %c0_i32_0 = arith.constant 0 : i32
    return %c0_i32, %arg0 : i32, i32
  }
  func.func @transform_4(%arg0: i32, %arg1: i32) -> (i32, i32) {
    %c0_i32 = arith.constant 0 : i32
    %c0_i32_0 = arith.constant 0 : i32
    return %c0_i32, %arg0 : i32, i32
  }
  func.func @transform_5(%arg0: i32, %arg1: i32) -> (i32, i32) {
    %c0_i32 = arith.constant 0 : i32
    %c0_i32_0 = arith.constant 0 : i32
    return %c0_i32, %arg0 : i32, i32
  }
  func.func @transform_6(%arg0: i32, %arg1: i32) -> (i32, i32, i32) {
    %c0_i32 = arith.constant 0 : i32
    %c0_i32_0 = arith.constant 0 : i32
    return %arg1, %c0_i32, %arg0 : i32, i32, i32
  }
  func.func @transform_7(%arg0: i32, %arg1: i32) -> (i32, i32, i32) {
    %c0_i32 = arith.constant 0 : i32
    %c0_i32_0 = arith.constant 0 : i32
    return %arg1, %c0_i32, %arg0 : i32, i32, i32
  }
  func.func @transform_8(%arg0: i32, %arg1: i32) -> (i32, i32) {
    %c0_i32 = arith.constant 0 : i32
    return %arg1, %arg0 : i32, i32
  }
  func.func @transform_9(%arg0: i32, %arg1: i32) -> (i32, i32) {
    %c0_i32 = arith.constant 0 : i32
    return %arg1, %arg0 : i32, i32
  }
  func.func @transform_10(%arg0: i32, %arg1: i32) -> (i32, i32) {
    %c0_i32 = arith.constant 0 : i32
    return %arg1, %arg0 : i32, i32
  }
  func.func @transform_11(%arg0: i32, %arg1: i32) -> (i32, i32) {
    %c0_i32 = arith.constant 0 : i32
    return %arg1, %arg0 : i32, i32
  }
}

</mosaic_0001>

<bundles_post_ra>
// kernel: tpu_custom_call.1
= control target key start
LH: loop header
LB: loop body
LE: loop exit
PB: predicated region body
PF: predicated region fallthrough
CT: control target
= control target key end

     0   :  { %17 = vsyncpa [#allocation3], 0  ;;  %s602_s0 = inlined_call_operand.vmem [shape: f32[2,8,4], index: 0, kind: input, shape index: {}]   ;;  %s603_s1 = inlined_call_operand.vmem [shape: f32[2,6,4], index: 1, kind: input, shape index: {}]   ;;  %s604_s2 = inlined_call_operand.vmem [shape: f32[8,4], index: 2, kind: input, shape index: {}]   ;;  %s605_s3 = inlined_call_operand.vmem [shape: f32[8,4], index: 3, kind: input, shape index: {}]   ;;  %s606_s4 = inlined_call_operand.vmem [shape: f32[1,4], index: 4, kind: input, shape index: {}]   ;;  %s607_s5 = inlined_call_operand.vmem [shape: f32[1,4], index: 5, kind: input, shape index: {}]   ;;  %s608_s6 = inlined_call_operand.vmem [shape: f32[2,8,4], index: 6, kind: output, shape index: {0}]   ;;  %s609_s7 = inlined_call_operand.vmem [shape: f32[2,6,4], index: 7, kind: output, shape index: {1}]   ;;  %s610_s8 = inlined_call_operand.hbm [shape: f32[2,4], index: 8, kind: output, shape index: {2}]   ;;  %s611_s9 = inlined_call_operand.hbm [shape: f32[2,4], index: 9, kind: output, shape index: {3}]   ;;  %s612_s10 = inlined_call_operand.hbm [shape: f32[2,4], index: 10, kind: output, shape index: {4}]   ;;  %s613_s11 = inlined_call_operand.hbm [shape: f32[2,4], index: 11, kind: output, shape index: {5}]  }
   0x1   :  { %18 = vsyncpa [#allocation5], 0  ;;  %v478_v0 = vld [vmem:[%s602_s0] sm:$0xff]  ;;  %v483_v1 = vld [vmem:[%s602_s0 + $0x8] sm:$0xff] }
   0x2   :  { %v35_v2 = vld [vmem:[%s605_s3] sm:$0xff] }
   0x3   :  { %v52_v3 = vmul.f32 %v35_v2, %v478_v0  ;;  %v53_v4 = vmul.f32 %v35_v2, %v483_v1  ;;  %v34_v5 = vld [vmem:[%s604_s2] sm:$0xff] }
   0x4   :  { %v36_v6 = vmul.f32 %v34_v5, %v478_v0  ;;  %v37_v7 = vmul.f32 %v34_v5, %v483_v1 }
   0x5   :  { %v54_v8 = vrot.slane %v52_v3, 4  ;;  %v60_v9 = vrot.slane %v53_v4, 4 }
   0x6   :  { %v38_v10 = vrot.slane %v36_v6, 4  ;;  %v44_v11 = vrot.slane %v37_v7, 4 }
   0x7   :  { %19 = vsyncpa [#allocation8], 0  ;;  %v55_v12 = vadd.f32 %v54_v8, %v52_v3  ;;  %v61_v13 = vadd.f32 %v60_v9, %v53_v4  ;;  %s410_s0 = smov [#allocation4]   ;;  %s411_s3 = smov [#allocation2]   ;;  %vm130_vm0 = vcmask 1041409  }
   0x8   :  { %v39_v14 = vadd.f32 %v38_v10, %v36_v6  ;;  %v45_v15 = vadd.f32 %v44_v11, %v37_v7  ;;  %s254_s2 = sshll.u32 %s410_s0, 4  ;;  %s244_s25 = sshll.u32 %s411_s3, 4  ;;  %s255_s2 = int_to_ptr.vmem [resolvable:$true] %s254_s2  ;;  %s504_s25 = int_to_ptr.vmem [resolvable:$true] %s244_s25 }
   0x9   :  { %v56_v16 = vrot.slane %v55_v12, 2  ;;  %v62_v17 = vrot.slane %v61_v13, 2  ;;  %s316_s26 = scalar_lea.vmem %s255_s2, 32  ;;  %p321_p1 = scmp.lt.s32.totalorder %s255_s2, %s255_s2 }
   0xa   :  { %v40_v18 = vrot.slane %v39_v14, 2  ;;  %v46_v19 = vrot.slane %v45_v15, 2  ;;  %p317_p0 = scmp.ne.s32.totalorder %s255_s2, %s316_s26  ;;  %p322_p2 = scmp.lt.s32.totalorder %s316_s26, %s316_s26 }
   0xb   :  { %v57_v20 = vadd.f32 %v56_v16, %v55_v12  ;;  %v63_v21 = vadd.f32 %v62_v17, %v61_v13 }
   0xc   :  { %v41_v22 = vadd.f32 %v40_v18, %v39_v14  ;;  %v47_v23 = vadd.f32 %v46_v19, %v45_v15  ;;  %p323_p3 = por %p322_p2, %p321_p1 }
   0xd   :  { %v58_v24 = vrot.slane %v57_v20, 1  ;;  %v64_v25 = vrot.slane %v63_v21, 1 }
   0xe   :  { %v42_v26 = vrot.slane %v41_v22, 1  ;;  %v48_v27 = vrot.slane %v47_v23, 1  ;;  %p324_p4 = pnand %p323_p3, %p317_p0 }
   0xf   :  { %v59_v28 = vadd.f32 %v58_v24, %v57_v20  ;;  %v65_v29 = vadd.f32 %v64_v25, %v63_v21 }
  0x10   :  { %v43_v30 = vadd.f32 %v42_v26, %v41_v22  ;;  %v49_v31 = vadd.f32 %v48_v27, %v47_v23 }
  0x11   :  { %v80_v32 = vmul.f32 0.70710677, %v59_v28  ;;  %v81_v33 = vmul.f32 0.70710677, %v65_v29  ;;  %v78_v36 = vmul.f32 0.5, %v59_v28  ;;  %v79_v38 = vmul.f32 0.5, %v65_v29 }
  0x12   :  { %v70_v34 = vmul.f32 0.70710677, %v43_v30  ;;  %v71_v35 = vmul.f32 0.70710677, %v49_v31  ;;  %v68_v41 = vmul.f32 0.5, %v43_v30  ;;  %v69_v44 = vmul.f32 0.5, %v49_v31 }
  0x13   :  { %304 = verf.f32 %v80_v32 }
  0x14   :  { %306 = verf.f32 %v81_v33 }
  0x15   :  { %308 = verf.f32 %v70_v34 }
  0x16   :  { %310 = verf.f32 %v71_v35 }
  0x1d   :  { %v305_v37 = vpop.eup %304 }
  0x1e   :  { %v307_v39 = vpop.eup %306  ;;  %v84_v40 = vadd.f32 1.0, %v305_v37 }
  0x1f   :  { %v309_v42 = vpop.eup %308  ;;  %v85_v43 = vadd.f32 1.0, %v307_v39 }
  0x20   :  { %v311_v45 = vpop.eup %310  ;;  %v86_v46 = vmul.f32 %v84_v40, %v78_v36  ;;  %v74_v47 = vadd.f32 1.0, %v309_v42 }
  0x21   :  { %v87_v48 = vmul.f32 %v85_v43, %v79_v38  ;;  %v75_v49 = vadd.f32 1.0, %v311_v45 }
  0x22   :  { %v90_v50 = vsub.f32 %v478_v0, %v86_v46  ;;  %v496_v51 = vmul.f32 %v74_v47, %v68_v41 }
  0x23   :  { %v91_v52 = vsub.f32 %v483_v1, %v87_v48  ;;  %v136_v53 = vsel %vm130_vm0, %v87_v48, %v86_v46  ;;  %v500_v54 = vmul.f32 %v75_v49, %v69_v44 }
  0x24   :  { %v108_v55 = vmul.f32 %v90_v50, %v90_v50  ;;  %138 = vst [vmem:[#allocation4] sm:$0x3] %v136_v53  ;;  %v88_v56 = vsub.f32 %v478_v0, %v496_v51 }
  0x25   :  { %v109_v57 = vmul.f32 %v91_v52, %v91_v52  ;;  %v89_v58 = vsub.f32 %v483_v1, %v500_v54  ;;  %v131_v59 = vsel %vm130_vm0, %v500_v54, %v496_v51 }
  0x26   :  { %327 = shalt.err (!%p324_p4)
}
  0x27   :  { %s328_s29 = scalar_lea.hbm %s611_s9, 32 }
  0x28   :  { %p329_p5 = scmp.ne.s32.totalorder %s611_s9, %s328_s29  ;;  %p332_p6 = scmp.lt.u32.totalorder %s328_s29, %s611_s9 }
  0x2a   :  { %p334_p7 = pnand %p332_p6, %p329_p5 }
  0x2c   :  { %337 = shalt.err (!%p334_p7)
}
  0x2d   :  { %257 = dma.vmem_to_hbm [thread:$0]  %s255_s2, 32, %s611_s9, [#allocation5]   ;;  %v110_v60 = vrot.slane %v108_v55, 4  ;;  %v92_v61 = vmul.f32 %v88_v56, %v88_v56  ;;  %133 = vst [vmem:[#allocation2] sm:$0x3] %v131_v59  ;;  %v116_v62 = vrot.slane %v109_v57, 4  ;;  %v93_v63 = vmul.f32 %v89_v58, %v89_v58 }
  0x2e   :  { %s338_s17 = scalar_lea.vmem %s504_s25, 32  ;;  %p343_p9 = scmp.lt.s32.totalorder %s504_s25, %s504_s25 }
  0x2f   :  { %p339_p8 = scmp.ne.s32.totalorder %s504_s25, %s338_s17  ;;  %p344_p10 = scmp.lt.s32.totalorder %s338_s17, %s338_s17 }
  0x31   :  { %p345_p11 = por %p344_p10, %p343_p9 }
  0x33   :  { %p346_p12 = pnand %p345_p11, %p339_p8 }
  0x35   :  { %349 = shalt.err (!%p346_p12)
}
  0x36   :  { %s350_s20 = scalar_lea.hbm %s610_s8, 32 }
  0x37   :  { %p351_p13 = scmp.ne.s32.totalorder %s610_s8, %s350_s20  ;;  %p354_p0 = scmp.lt.u32.totalorder %s350_s20, %s610_s8 }
  0x39   :  { %p356_p1 = pnand %p354_p0, %p351_p13 }
  0x3b   :  { %359 = shalt.err (!%p356_p1)
}
  0x3c   :  { %247 = dma.vmem_to_hbm [thread:$0]  %s504_s25, 32, %s610_s8, [#allocation3]   ;;  %v94_v2 = vrot.slane %v92_v61, 4  ;;  %v111_v3 = vadd.f32 %v110_v60, %v108_v55  ;;  %v100_v4 = vrot.slane %v93_v63, 4  ;;  %v117_v5 = vadd.f32 %v116_v62, %v109_v57 }
  0x3d   :  { %s412_s8 = smov [#allocation7]   ;;  %s413_s3 = smov [#allocation6]  }
  0x3e   :  { %v95_v6 = vadd.f32 %v94_v2, %v92_v61  ;;  %v112_v7 = vrot.slane %v111_v3, 2  ;;  %v101_v8 = vadd.f32 %v100_v4, %v93_v63  ;;  %v118_v9 = vrot.slane %v117_v5, 2  ;;  %s274_s2 = sshll.u32 %s412_s8, 4  ;;  %s264_s25 = sshll.u32 %s413_s3, 4  ;;  %s275_s2 = int_to_ptr.vmem [resolvable:$true] %s274_s2  ;;  %s541_s25 = int_to_ptr.vmem [resolvable:$true] %s264_s25 }
  0x3f   :  { %s360_s26 = scalar_lea.vmem %s275_s2, 32  ;;  %p365_p3 = scmp.lt.s32.totalorder %s275_s2, %s275_s2 }
  0x40   :  { %v96_v10 = vrot.slane %v95_v6, 2  ;;  %v113_v11 = vadd.f32 %v112_v7, %v111_v3  ;;  %v102_v12 = vrot.slane %v101_v8, 2  ;;  %v119_v13 = vadd.f32 %v118_v9, %v117_v5  ;;  %p361_p2 = scmp.ne.s32.totalorder %s275_s2, %s360_s26  ;;  %p366_p4 = scmp.lt.s32.totalorder %s360_s26, %s360_s26 }
  0x42   :  { %v97_v14 = vadd.f32 %v96_v10, %v95_v6  ;;  %v114_v15 = vrot.slane %v113_v11, 1  ;;  %v103_v16 = vadd.f32 %v102_v12, %v101_v8  ;;  %v120_v17 = vrot.slane %v119_v13, 1  ;;  %p367_p5 = por %p366_p4, %p365_p3 }
  0x44   :  { %v98_v18 = vrot.slane %v97_v14, 1  ;;  %v115_v19 = vadd.f32 %v114_v15, %v113_v11  ;;  %v104_v20 = vrot.slane %v103_v16, 1  ;;  %v121_v21 = vadd.f32 %v120_v17, %v119_v13  ;;  %p368_p6 = pnand %p367_p5, %p361_p2 }
  0x46   :  { %v99_v22 = vadd.f32 %v98_v18, %v97_v14  ;;  %v126_v23 = vmul.f32 0.14285715, %v115_v19  ;;  %v105_v24 = vadd.f32 %v104_v20, %v103_v16  ;;  %v127_v25 = vmul.f32 0.14285715, %v121_v21 }
  0x48   :  { %v124_v26 = vmul.f32 0.14285715, %v99_v22  ;;  %v125_v27 = vmul.f32 0.14285715, %v105_v24  ;;  %v146_v28 = vsel %vm130_vm0, %v127_v25, %v126_v23 }
  0x49   :  { %148 = vst [vmem:[#allocation7] sm:$0x3] %v146_v28 }
  0x4a   :  { %v151_v29 = vadd.f32 1e-08, %v124_v26  ;;  %v141_v30 = vsel %vm130_vm0, %v125_v27, %v124_v26  ;;  %v152_v31 = vadd.f32 1e-08, %v125_v27 }
  0x4b   :  { %371 = shalt.err (!%p368_p6)
}
  0x4c   :  { %s372_s29 = scalar_lea.hbm %s613_s11, 32 }
  0x4d   :  { %p373_p7 = scmp.ne.s32.totalorder %s613_s11, %s372_s29  ;;  %p376_p8 = scmp.lt.u32.totalorder %s372_s29, %s613_s11 }
  0x4f   :  { %p378_p9 = pnand %p376_p8, %p373_p7 }
  0x51   :  { %381 = shalt.err (!%p378_p9)
}
  0x52   :  { %277 = dma.vmem_to_hbm [thread:$0]  %s275_s2, 32, %s613_s11, [#allocation8]   ;;  %143 = vst [vmem:[#allocation6] sm:$0x3] %v141_v30  ;;  %312 = vrsqrt.f32 %v151_v29 }
  0x53   :  { %314 = vrsqrt.f32 %v152_v31  ;;  %s382_s17 = scalar_lea.vmem %s541_s25, 32  ;;  %p387_p11 = scmp.lt.s32.totalorder %s541_s25, %s541_s25 }
  0x54   :  { %p383_p10 = scmp.ne.s32.totalorder %s541_s25, %s382_s17  ;;  %p388_p12 = scmp.lt.s32.totalorder %s382_s17, %s382_s17 }
  0x56   :  { %p389_p13 = por %p388_p12, %p387_p11 }
  0x58   :  { %p390_p0 = pnand %p389_p13, %p383_p10 }
  0x5a   :  { %393 = shalt.err (!%p390_p0)
}
  0x5b   :  { %s394_s20 = scalar_lea.hbm %s612_s10, 32 }
  0x5c   :  { %p395_p1 = scmp.ne.s32.totalorder %s612_s10, %s394_s20  ;;  %p398_p2 = scmp.lt.u32.totalorder %s394_s20, %s612_s10 }
  0x5e   :  { %p400_p3 = pnand %p398_p2, %p395_p1 }
  0x60   :  { %403 = shalt.err (!%p400_p3)
}
  0x61   :  { %267 = dma.vmem_to_hbm [thread:$0]  %s541_s25, 32, %s612_s10, [#allocation5]   ;;  %v297_v32 = vld [vmem:[%s606_s4] ss:$0 sm:$0xff]  ;;  %v414_v33 = vmov 1966171168   ;;  %v181_v35 = vlaneseq  ;;  %v313_v36 = vpop.eup %312 }
  0x62   :  { %v179_v34 = vunpack.c.l.s4 %v414_v33  ;;  %v315_v37 = vpop.eup %314  ;;  %v161_v38 = vmul.f32 %v313_v36, %v297_v32  ;;  %v298_v45 = vld [vmem:[%s607_s5] ss:$0 sm:$0xff] }
  0x63   :  { %v162_v39 = vmul.f32 %v315_v37, %v297_v32  ;;  %v182_v41 = vshrl.u32 %v181_v35, 7  ;;  %v226_v52 = vld [vmem:[%s603_s1] sm:$0x3f] }
  0x64   :  { %v180_v40 = vunpack.c.0.s8 %v179_v34  ;;  %v163_v42 = vmul.f32 %v161_v38, %v496_v51  ;;  %v227_v51 = vld [vmem:[%s603_s1 + $0x8] sm:$0x3f] }
  0x65   :  { %v164_v43 = vmul.f32 %v162_v39, %v500_v54  ;;  %v204_v44 = vsub.s32 0, %v182_v41 }
  0x66   :  { %v183_v47 = vsub.s32 %v180_v40, %v182_v41 }
  0x67   :  { %v173_v46 = vrot.slane %v164_v43, 7  ;;  %v205_v50 = vrot.slane %v161_v38, %v204_v44  ;;  %v209_v55 = vrot.slane %v162_v39, %v204_v44 }
  0x69   :  { %v174_v48 = vsel %vm130_vm0, %v173_v46, %v163_v42  ;;  %v210_v56 = vmul.f32 %v205_v50, %v478_v0  ;;  %v228_v58 = vmul.f32 %v226_v52, %v205_v50  ;;  %v211_v61 = vmul.f32 %v209_v55, %v483_v1 }
  0x6a   :  { %v176_v49 = vsub.f32 %v298_v45, %v174_v48  ;;  %v229_v62 = vmul.f32 %v227_v51, %v209_v55 }
  0x6c   :  { %v184_v53 = vrot.slane %v176_v49, %v183_v47 }
  0x6e   :  { %v192_v54 = vrot.slane %v184_v53, %v183_v47  ;;  %v185_v57 = vcombine.high %v184_v53, %v184_v53 }
  0x70   :  { %v215_v59 = vrot.slane %v192_v54, %v204_v44  ;;  %v199_v60 = vrot.slane %v185_v57, %v183_v47 }
  0x72   :  { %v222_v63 = vadd.f32 %v215_v59, %v210_v56  ;;  %v219_v2 = vrot.slane %v199_v60, %v204_v44  ;;  %v230_v3 = vadd.f32 %v228_v58, %v215_v59 }
  0x74   :  { %224 = vst [vmem:[%s608_s6] sm:$0xff] %v222_v63  ;;  %v223_v4 = vadd.f32 %v219_v2, %v211_v61  ;;  %232 = vst [vmem:[%s609_s7] sm:$0x3f] %v230_v3  ;;  %v231_v0 = vadd.f32 %v229_v62, %v219_v2 }
  0x76   :  { %225 = vst [vmem:[%s608_s6 + $0x8] sm:$0xff] %v223_v4  ;;  %233 = vst [vmem:[%s609_s7 + $0x8] sm:$0x3f] %v231_v0 }
  0x77   :  { %404 = dma.done.wait [#allocation3], 32  }
  0x78   :  { %405 = vsyncadd [#allocation3], 4294967264 }
  0x79   :  { %406 = dma.done.wait [#allocation5], 64  }
  0x7a   :  { %407 = vsyncadd [#allocation5], 4294967232 }
  0x7b   :  { %408 = dma.done.wait [#allocation8], 32  }
  0x7c   :  { %409 = vsyncadd [#allocation8], 4294967264 }
  0x7d   :  { %294 = vsyncpa [#allocation3], 1 }
  0x7e   :  { %295 = vsyncpa [#allocation5], 1 }
  0x7f   :  { %296 = vsyncpa [#allocation8], 1 }

</bundles_post_ra>
